<compile_context>
chip_gen: v6e
topology: v6e:2x2x1
jax: 0.10.0
libtpu: 0.0.40
codegen_flags: <defaults>
</compile_context>

<pallas_src>
import jax
import jax.numpy as jnp
import numpy as np
from jax.experimental import pallas as pl
from jax.experimental.pallas import tpu as pltpu


def _round_up(x, m):
    return ((x + m - 1) // m) * m


def fact_embed_kernel(ids_ref, emb_ref, w_ref, b_ref, out_ref, acc_ref):
    # ids_ref: (tm, 1) int32          -- token-id tile
    # emb_ref: (tv, E_pad) f32        -- one vocab block of the embedding table
    # w_ref:   (E_pad, H_pad) f32     -- projection weight (grid-invariant)
    # b_ref:   (1, H_pad) f32         -- bias (grid-invariant)
    # out_ref: (tm, H_pad) f32        -- output tile (revisited across vocab blocks)
    # acc_ref: (tm, E_pad) f32 VMEM scratch -- gathered-embedding accumulator
    k = pl.program_id(1)

    @pl.when(k == 0)
    def _():
        acc_ref[...] = jnp.zeros_like(acc_ref)

    tm = ids_ref.shape[0]
    tv = emb_ref.shape[0]
    ids = ids_ref[...]                                                # (tm, 1)
    # Global vocab index of each column of this vocab block.
    col = jax.lax.broadcasted_iota(jnp.int32, (tm, tv), 1) + k * tv   # (tm, tv)
    onehot = (col == ids).astype(emb_ref.dtype)                       # exact 0/1
    # Gather as an MXU matmul: (tm, tv) @ (tv, E_pad), accumulated over vocab blocks.
    acc_ref[...] += jnp.dot(onehot, emb_ref[...],
                            preferred_element_type=jnp.float32)

    @pl.when(k == pl.num_programs(1) - 1)
    def _():
        # Projection runs once per token tile, not once per vocab block.
        out = jnp.dot(acc_ref[...], w_ref[...],
                      preferred_element_type=jnp.float32) + b_ref[...]
        out_ref[...] = out.astype(out_ref.dtype)


def factorized_embedding(x, emb_table, w, b, *, tm=256, tv_max=512):
    """FactorizedEmbedding forward.

    x:         [batch, seq] integer token ids in [0, vocab_size]
    emb_table: [vocab_size + 1, embed] f32, row 0 == zeros (padding_idx=0)
    w:         [embed, hidden] f32  (transpose of PyTorch nn.Linear weight)
    b:         [hidden] or [1, hidden] f32
    returns    [batch, seq, hidden] f32
    """
    batch, seq = x.shape
    n = batch * seq
    v_p1, embed = emb_table.shape
    embed_w, hidden = w.shape
    assert embed_w == embed
    b2 = jnp.asarray(b).reshape(1, hidden)

    # Pad every matmul-facing dim to MXU/lane-friendly multiples (exact: zero padding).
    e_pad = _round_up(embed, 128)
    h_pad = _round_up(hidden, 128)              # lane-dense output stores
    tv = tv_max if v_p1 > tv_max else _round_up(v_p1, 128)
    v_pad = _round_up(v_p1, tv)
    n_pad = _round_up(n, tm)                    # pad tokens with id 0 (zero row)

    ids = jnp.pad(x.reshape(n).astype(jnp.int32), (0, n_pad - n)).reshape(n_pad, 1)
    emb_p = jnp.pad(emb_table.astype(jnp.float32),
                    ((0, v_pad - v_p1), (0, e_pad - embed)))
    w_p = jnp.pad(w.astype(jnp.float32),
                  ((0, e_pad - embed), (0, h_pad - hidden)))
    b_p = jnp.pad(b2.astype(jnp.float32), ((0, 0), (0, h_pad - hidden)))

    grid = (n_pad // tm, v_pad // tv)

    out_flat = pl.pallas_call(
        fact_embed_kernel,
        out_shape=jax.ShapeDtypeStruct((n_pad, h_pad), jnp.float32),
        grid_spec=pltpu.PrefetchScalarGridSpec(
            num_scalar_prefetch=0,
            grid=grid,
            in_specs=[
                pl.BlockSpec((tm, 1), lambda i, k: (i, 0)),        # token ids tile
                pl.BlockSpec((tv, e_pad), lambda i, k: (k, 0)),    # vocab block of table
                pl.BlockSpec((e_pad, h_pad), lambda i, k: (0, 0)), # projection weight
                pl.BlockSpec((1, h_pad), lambda i, k: (0, 0)),     # bias
            ],
            out_specs=pl.BlockSpec((tm, h_pad), lambda i, k: (i, 0)),
            scratch_shapes=[pltpu.VMEM((tm, e_pad), jnp.float32)],
        ),
        compiler_params=pltpu.CompilerParams(
            dimension_semantics=("parallel", "arbitrary"),
            vmem_limit_bytes=32 * 1024 * 1024,
        ),
    )(ids, emb_p, w_p, b_p)

    return out_flat[:n, :hidden].reshape(batch, seq, hidden)


def _reference(x, emb_table, w, b):
    return jnp.take(emb_table, x, axis=0) @ w + jnp.asarray(b).reshape(-1)


if __name__ == "__main__":
    key = jax.random.PRNGKey(0)

    # --- Case 1: small shapes consistent with the module's forward ---------------
    vocab_size, embed_size, hidden_size = 16, 8, 32
    batch, seq = 2, 8
    k_emb, k_w, k_b, k_x, key = jax.random.split(key, 5)

    # nn.Embedding(vocab_size + 1, embed_size, padding_idx=0): row 0 is zeros.
    emb_table = jax.random.normal(k_emb, (vocab_size + 1, embed_size), jnp.float32)
    emb_table = emb_table.at[0].set(0.0)
    # nn.Linear(embed_size, hidden_size): store weight as (embed, hidden) = W_pt.T
    bound = 1.0 / np.sqrt(embed_size)
    w = jax.random.uniform(k_w, (embed_size, hidden_size), jnp.float32, -bound, bound)
    b = jax.random.uniform(k_b, (hidden_size,), jnp.float32, -bound, bound)
    x = jax.random.randint(k_x, (batch, seq), 0, vocab_size + 1, dtype=jnp.int32)

    out = jax.block_until_ready(factorized_embedding(x, emb_table, w, b))
    ref = _reference(x, emb_table, w, b)
    np.testing.assert_allclose(np.asarray(out), np.asarray(ref), rtol=1e-5, atol=1e-5)
    assert out.shape == (batch, seq, hidden_size)

    # --- Case 2: vocab larger than one vocab tile (exercises accumulation path) --
    vocab_size2, embed_size2, hidden_size2 = 700, 8, 160
    batch2, seq2 = 3, 7
    k_emb, k_w, k_b, k_x, key = jax.random.split(key, 5)

    emb_table2 = jax.random.normal(k_emb, (vocab_size2 + 1, embed_size2), jnp.float32)
    emb_table2 = emb_table2.at[0].set(0.0)
    bound2 = 1.0 / np.sqrt(embed_size2)
    w2 = jax.random.uniform(k_w, (embed_size2, hidden_size2), jnp.float32, -bound2, bound2)
    b2 = jax.random.uniform(k_b, (hidden_size2,), jnp.float32, -bound2, bound2)
    x2 = jax.random.randint(k_x, (batch2, seq2), 0, vocab_size2 + 1, dtype=jnp.int32)

    out2 = jax.block_until_ready(factorized_embedding(x2, emb_table2, w2, b2))
    ref2 = _reference(x2, emb_table2, w2, b2)
    np.testing.assert_allclose(np.asarray(out2), np.asarray(ref2), rtol=1e-5, atol=1e-5)
    assert out2.shape == (batch2, seq2, hidden_size2)

    print("KERNEL_OK")
</pallas_src>

<mosaic_0001>
module attributes {stable_mosaic.version = 11 : i64} {
  func.func @fact_embed_kernel(%arg0: i32, %arg1: i32, %arg2: memref<256x1xi32, #tpu.memory_space<vmem>>, %arg3: memref<128x128xf32, #tpu.memory_space<vmem>>, %arg4: memref<128x128xf32, #tpu.memory_space<vmem>>, %arg5: memref<1x128xf32, #tpu.memory_space<vmem>>, %arg6: memref<256x128xf32, #tpu.memory_space<vmem>>, %arg7: memref<256x128xf32, #tpu.memory_space<vmem>>) attributes {dimension_semantics = [#tpu.dimension_semantics<parallel>, #tpu.dimension_semantics<arbitrary>], iteration_bounds = array<i64: 1, 1>, scalar_prefetch = 0 : i64, scratch_operands = 1 : i64, tpu.core_type = #tpu.core_type<tc>, window_params = [{transform_indices = @transform_0, window_bounds = array<i64: 256, 1>}, {transform_indices = @transform_1, window_bounds = array<i64: 128, 128>}, {pipeline_mode = #tpu.pipeline_mode<synchronous>, transform_indices = @transform_2, window_bounds = array<i64: 128, 128>}, {pipeline_mode = #tpu.pipeline_mode<synchronous>, transform_indices = @transform_3, window_bounds = array<i64: 1, 128>}, {transform_indices = @transform_4, window_bounds = array<i64: 256, 128>}]} {
    %c0_i32 = arith.constant 0 : i32
    %0 = arith.cmpi eq, %arg1, %c0_i32 : i32
    %1 = arith.extui %0 : i1 to i32
    %c0_i32_0 = arith.constant 0 : i32
    %2 = arith.cmpi ne, %1, %c0_i32_0 : i32
    scf.if %2 {
      %cst_10 = arith.constant 0.000000e+00 : f32
      %20 = vector.broadcast %cst_10 : f32 to vector<256x128xf32>
      %c0_11 = arith.constant 0 : index
      %c0_12 = arith.constant 0 : index
      %21 = vector.load %arg7[%c0_11, %c0_12] : memref<256x128xf32, #tpu.memory_space<vmem>>, vector<256x128xf32>
      tpu.vector_store %arg7[%c0_11, %c0_12], %20 {strides = array<i32>} : memref<256x128xf32, #tpu.memory_space<vmem>>, vector<256x128xf32>,
    } else {
    }
    %c0 = arith.constant 0 : index
    %c0_1 = arith.constant 0 : index
    %3 = vector.load %arg2[%c0, %c0_1] : memref<256x1xi32, #tpu.memory_space<vmem>>, vector<256x1xi32>
    %4 = tpu.iota {dimensions = array<i32: 1>} : vector<256x128xi32>
    %c128_i32 = arith.constant 128 : i32
    %5 = arith.muli %arg1, %c128_i32 : i32
    %6 = vector.broadcast %5 : i32 to vector<256x128xi32>
    %7 = arith.addi %4, %6 : vector<256x128xi32>
    %8 = vector.broadcast %3 : vector<256x1xi32> to vector<256x128xi32>
    %9 = arith.cmpi eq, %7, %8 : vector<256x128xi32>
    %10 = arith.extui %9 : vector<256x128xi1> to vector<256x128xi32>
    %11 = arith.sitofp %10 : vector<256x128xi32> to vector<256x128xf32>
    %c0_2 = arith.constant 0 : index
    %c0_3 = arith.constant 0 : index
    %12 = vector.load %arg7[%c0_2, %c0_3] : memref<256x128xf32, #tpu.memory_space<vmem>>, vector<256x128xf32>
    %c0_4 = arith.constant 0 : index
    %c0_5 = arith.constant 0 : index
    %13 = vector.load %arg3[%c0_4, %c0_5] : memref<128x128xf32, #tpu.memory_space<vmem>>, vector<128x128xf32>
    %cst = arith.constant dense<0.000000e+00> : vector<256x128xf32>
    %14 = tpu.matmul %11, %13, %cst {dimension_numbers = #tpu.dot_dimension_numbers<[1], [0], [0], [1], [0, 0, 1, 1], [], []>} : vector<256x128xf32>, vector<128x128xf32>, vector<256x128xf32> -> vector<256x128xf32>
    %15 = arith.addf %12, %14 : vector<256x128xf32>
    %c0_6 = arith.constant 0 : index
    %c0_7 = arith.constant 0 : index
    %16 = vector.load %arg7[%c0_6, %c0_7] : memref<256x128xf32, #tpu.memory_space<vmem>>, vector<256x128xf32>
    tpu.vector_store %arg7[%c0_6, %c0_7], %15 {strides = array<i32>} : memref<256x128xf32, #tpu.memory_space<vmem>>, vector<256x128xf32>,
    %c0_i32_8 = arith.constant 0 : i32
    %17 = arith.cmpi eq, %arg1, %c0_i32_8 : i32
    %18 = arith.extui %17 : i1 to i32
    %c0_i32_9 = arith.constant 0 : i32
    %19 = arith.cmpi ne, %18, %c0_i32_9 : i32
    scf.if %19 {
      %c0_10 = arith.constant 0 : index
      %c0_11 = arith.constant 0 : index
      %20 = vector.load %arg7[%c0_10, %c0_11] : memref<256x128xf32, #tpu.memory_space<vmem>>, vector<256x128xf32>
      %c0_12 = arith.constant 0 : index
      %c0_13 = arith.constant 0 : index
      %21 = vector.load %arg4[%c0_12, %c0_13] : memref<128x128xf32, #tpu.memory_space<vmem>>, vector<128x128xf32>
      %cst_14 = arith.constant dense<0.000000e+00> : vector<256x128xf32>
      %22 = tpu.matmul %20, %21, %cst_14 {dimension_numbers = #tpu.dot_dimension_numbers<[1], [0], [0], [1], [0, 0, 1, 1], [], []>} : vector<256x128xf32>, vector<128x128xf32>, vector<256x128xf32> -> vector<256x128xf32>
      %c0_15 = arith.constant 0 : index
      %c0_16 = arith.constant 0 : index
      %23 = vector.load %arg5[%c0_15, %c0_16] : memref<1x128xf32, #tpu.memory_space<vmem>>, vector<1x128xf32>
      %24 = vector.broadcast %23 : vector<1x128xf32> to vector<256x128xf32>
      %25 = arith.addf %22, %24 : vector<256x128xf32>
      %c0_17 = arith.constant 0 : index
      %c0_18 = arith.constant 0 : index
      %26 = vector.load %arg6[%c0_17, %c0_18] : memref<256x128xf32, #tpu.memory_space<vmem>>, vector<256x128xf32>
      tpu.vector_store %arg6[%c0_17, %c0_18], %25 {strides = array<i32>} : memref<256x128xf32, #tpu.memory_space<vmem>>, vector<256x128xf32>,
    } else {
    }
    return
  }
  func.func @transform_0(%arg0: i32, %arg1: i32) -> (i32, i32) {
    %c0_i32 = arith.constant 0 : i32
    %c0_i32_0 = arith.constant 0 : i32
    return %arg0, %c0_i32 : i32, i32
  }
  func.func @transform_1(%arg0: i32, %arg1: i32) -> (i32, i32) {
    %c0_i32 = arith.constant 0 : i32
    %c0_i32_0 = arith.constant 0 : i32
    return %arg1, %c0_i32 : i32, i32
  }
  func.func @transform_2(%arg0: i32, %arg1: i32) -> (i32, i32) {
    %c0_i32 = arith.constant 0 : i32
    %c0_i32_0 = arith.constant 0 : i32
    %c0_i32_1 = arith.constant 0 : i32
    return %c0_i32, %c0_i32_0 : i32, i32
  }
  func.func @transform_3(%arg0: i32, %arg1: i32) -> (i32, i32) {
    %c0_i32 = arith.constant 0 : i32
    %c0_i32_0 = arith.constant 0 : i32
    %c0_i32_1 = arith.constant 0 : i32
    return %c0_i32, %c0_i32_0 : i32, i32
  }
  func.func @transform_4(%arg0: i32, %arg1: i32) -> (i32, i32) {
    %c0_i32 = arith.constant 0 : i32
    %c0_i32_0 = arith.constant 0 : i32
    return %arg0, %c0_i32 : i32, i32
  }
}

</mosaic_0001>

<bundles_post_ra>
// kernel: tpu_custom_call.1
= control target key start
LH: loop header
LB: loop body
LE: loop exit
PB: predicated region body
PF: predicated region fallthrough
CT: control target
= control target key end

     0   :  { %v1301_v2 = vmov 0   ;;  %s1629_s0 = inlined_call_operand.vmem [shape: s32[256,1], index: 0, kind: input, shape index: {}]   ;;  %s1630_s1 = inlined_call_operand.vmem [shape: f32[128,128], index: 1, kind: input, shape index: {}]   ;;  %s1631_s2 = inlined_call_operand.vmem [shape: f32[128,128], index: 2, kind: input, shape index: {}]   ;;  %s1632_s3 = inlined_call_operand.vmem [shape: f32[1,128], index: 3, kind: input, shape index: {}]   ;;  %s1633_s4 = inlined_call_operand.hbm [shape: f32[256,128], index: 4, kind: output, shape index: {}]  }
   0x1   :  { %v56_v0 = vld [vmem:[%s1629_s0 + $0x10] sm:$0xff]  ;;  %v54_v1 = vld [vmem:[%s1629_s0] sm:$0xff]  ;;  %1278 = vset.pattern.permute.xlu1 %v1301_v2  ;;  %1277 = vset.pattern.permute.xlu0 %v1301_v2  ;;  %v57_v3 = vld [vmem:[%s1629_s0 + $0x18] sm:$0xff] }
   0x2   :  { %98 = vperm.xlu1 %1278, %v56_v0   ;;  %92 = vperm.xlu0 %1277, %v54_v1   ;;  %v55_v4 = vld [vmem:[%s1629_s0 + $0x8] sm:$0xff]  ;;  %v58_v6 = vld [vmem:[%s1629_s0 + $0x20] sm:$0xff]  ;;  %v330_v7 = vld [vmem:[%s1630_s1 + $0x78] sm:$0xff] }
   0x3   :  { %v59_v5 = vld [vmem:[%s1629_s0 + $0x28] sm:$0xff]  ;;  %v61_v8 = vld [vmem:[%s1629_s0 + $0x38] sm:$0xff]  ;;  %v60_v9 = vld [vmem:[%s1629_s0 + $0x30] sm:$0xff]  ;;  %1112 = vmatprep.subr.mxu0 %v330_v7 }
   0x4   :  { %v329_v10 = vld [vmem:[%s1630_s1 + $0x70] sm:$0xff]  ;;  %1113 = vmatpush3.msra.mxu0 %v330_v7  ;;  %v328_v11 = vld [vmem:[%s1630_s1 + $0x68] sm:$0xff]  ;;  %v62_v13 = vld [vmem:[%s1629_s0 + $0x40] sm:$0xff] }
   0x5   :  { %1114 = vmatprep.subr.mxu0 %v329_v10  ;;  %v63_v12 = vld [vmem:[%s1629_s0 + $0x48] sm:$0xff]  ;;  %v327_v14 = vld [vmem:[%s1630_s1 + $0x60] sm:$0xff] }
   0x6   :  { %101 = vperm.xlu1 %1278, %v57_v3   ;;  %95 = vperm.xlu0 %1277, %v55_v4  }
   0x7   :  { %1115 = vmatpush3.msra.mxu0 %v329_v10 }
   0x8   :  { %1116 = vmatprep.subr.mxu0 %v328_v11 }
   0xa   :  { %107 = vperm.xlu1 %1278, %v59_v5   ;;  %104 = vperm.xlu0 %1277, %v58_v6  }
   0xe   :  { %113 = vperm.xlu1 %1278, %v61_v8   ;;  %110 = vperm.xlu0 %1277, %v60_v9  }
   0xf   :  { %9 = vsyncpa [#allocation4], 0  ;;  %1117 = vmatpush3.msra.mxu0 %v328_v11  ;;  %v326_v15 = vld [vmem:[%s1630_s1 + $0x58] sm:$0xff]  ;;  %v64_v17 = vld [vmem:[%s1629_s0 + $0x50] sm:$0xff]  ;;  %v86_v63 = vlaneseq  ;;  %v1302_v3 = vmov 1.0  }
  0x10   :  { %v65_v16 = vld [vmem:[%s1629_s0 + $0x58] sm:$0xff]  ;;  %1118 = vmatprep.subr.mxu0 %v327_v14  ;;  %v325_v18 = vld [vmem:[%s1630_s1 + $0x50] sm:$0xff]  ;;  %v67_v19 = vld [vmem:[%s1629_s0 + $0x68] sm:$0xff] }
  0x11   :  { %1119 = vmatpush3.msra.mxu0 %v327_v14  ;;  %v66_v20 = vld [vmem:[%s1629_s0 + $0x60] sm:$0xff]  ;;  %v324_v21 = vld [vmem:[%s1630_s1 + $0x48] sm:$0xff]  ;;  %v69_v23 = vld [vmem:[%s1629_s0 + $0x78] sm:$0xff]  ;;  %v1517_v0 = vand.u32 127, %v86_v63 }
  0x12   :  { %119 = vperm.xlu1 %1278, %v63_v12   ;;  %116 = vperm.xlu0 %1277, %v62_v13   ;;  %v323_v22 = vld [vmem:[%s1630_s1 + $0x40] sm:$0xff]  ;;  %v68_v24 = vld [vmem:[%s1629_s0 + $0x70] sm:$0xff]  ;;  %v322_v25 = vld [vmem:[%s1630_s1 + $0x38] sm:$0xff] }
  0x13   :  { %1120 = vmatprep.subr.mxu0 %v326_v15  ;;  %v71_v26 = vld [vmem:[%s1629_s0 + $0x88] sm:$0xff]  ;;  %v70_v27 = vld [vmem:[%s1629_s0 + $0x80] sm:$0xff]  ;;  %v321_v28 = vld [vmem:[%s1630_s1 + $0x30] sm:$0xff] }
  0x14   :  { %1121 = vmatpush3.msra.mxu0 %v326_v15  ;;  %v320_v29 = vld [vmem:[%s1630_s1 + $0x28] sm:$0xff]  ;;  %v73_v30 = vld [vmem:[%s1629_s0 + $0x98] sm:$0xff]  ;;  %v72_v31 = vld [vmem:[%s1629_s0 + $0x90] sm:$0xff] }
  0x15   :  { %1122 = vmatprep.subr.mxu0 %v325_v18  ;;  %v319_v32 = vld [vmem:[%s1630_s1 + $0x20] sm:$0xff]  ;;  %v75_v33 = vld [vmem:[%s1629_s0 + $0xa8] sm:$0xff]  ;;  %v318_v35 = vld [vmem:[%s1630_s1 + $0x18] sm:$0xff] }
  0x16   :  { %125 = vperm.xlu1 %1278, %v65_v16   ;;  %122 = vperm.xlu0 %1277, %v64_v17   ;;  %v74_v34 = vld [vmem:[%s1629_s0 + $0xa0] sm:$0xff]  ;;  %v317_v36 = vld [vmem:[%s1630_s1 + $0x10] sm:$0xff]  ;;  %v77_v37 = vld [vmem:[%s1629_s0 + $0xb8] sm:$0xff] }
  0x17   :  { %1123 = vmatpush3.msra.mxu0 %v325_v18  ;;  %v76_v38 = vld [vmem:[%s1629_s0 + $0xb0] sm:$0xff]  ;;  %v316_v39 = vld [vmem:[%s1630_s1 + $0x8] sm:$0xff]  ;;  %v78_v41 = vld [vmem:[%s1629_s0 + $0xc0] sm:$0xff] }
  0x18   :  { %1124 = vmatprep.subr.mxu0 %v324_v21  ;;  %v79_v40 = vld [vmem:[%s1629_s0 + $0xc8] sm:$0xff]  ;;  %v315_v42 = vld [vmem:[%s1630_s1] sm:$0xff]  ;;  %v81_v43 = vld [vmem:[%s1629_s0 + $0xd8] sm:$0xff] }
  0x19   :  { %1125 = vmatpush3.msra.mxu0 %v324_v21  ;;  %v80_v44 = vld [vmem:[%s1629_s0 + $0xd0] sm:$0xff]  ;;  %v83_v45 = vld [vmem:[%s1629_s0 + $0xe8] sm:$0xff]  ;;  %v82_v46 = vld [vmem:[%s1629_s0 + $0xe0] sm:$0xff] }
  0x1a   :  { %131 = vperm.xlu1 %1278, %v67_v19   ;;  %128 = vperm.xlu0 %1277, %v66_v20   ;;  %v85_v47 = vld [vmem:[%s1629_s0 + $0xf8] sm:$0xff]  ;;  %v84_v48 = vld [vmem:[%s1629_s0 + $0xf0] sm:$0xff]  ;;  %v668_v51 = vld [vmem:[%s1631_s2 + $0x68] sm:$0xff] }
  0x1b   :  { %1126 = vmatprep.subr.mxu0 %v323_v22  ;;  %v670_v49 = vld [vmem:[%s1631_s2 + $0x78] sm:$0xff]  ;;  %v669_v50 = vld [vmem:[%s1631_s2 + $0x70] sm:$0xff]  ;;  %v667_v52 = vld [vmem:[%s1631_s2 + $0x60] sm:$0xff] }
  0x1c   :  { %1127 = vmatpush3.msra.mxu0 %v323_v22  ;;  %1192 = vmatprep.subr.mxu1 %v670_v49  ;;  %v666_v53 = vld [vmem:[%s1631_s2 + $0x58] sm:$0xff]  ;;  %v665_v54 = vld [vmem:[%s1631_s2 + $0x50] sm:$0xff]  ;;  %v664_v55 = vld [vmem:[%s1631_s2 + $0x48] sm:$0xff] }
  0x1d   :  { %1128 = vmatprep.subr.mxu0 %v322_v25  ;;  %1193 = vmatpush3.msra.mxu1 %v670_v49  ;;  %v663_v56 = vld [vmem:[%s1631_s2 + $0x40] sm:$0xff]  ;;  %v662_v57 = vld [vmem:[%s1631_s2 + $0x38] sm:$0xff]  ;;  %v661_v58 = vld [vmem:[%s1631_s2 + $0x30] sm:$0xff] }
  0x1e   :  { %137 = vperm.xlu1 %1278, %v69_v23   ;;  %134 = vperm.xlu0 %1277, %v68_v24   ;;  %v660_v59 = vld [vmem:[%s1631_s2 + $0x28] sm:$0xff]  ;;  %v659_v60 = vld [vmem:[%s1631_s2 + $0x20] sm:$0xff]  ;;  %v658_v61 = vld [vmem:[%s1631_s2 + $0x18] sm:$0xff] }
  0x1f   :  { %1129 = vmatpush3.msra.mxu0 %v322_v25  ;;  %1194 = vmatprep.subr.mxu1 %v669_v50  ;;  %v657_v62 = vld [vmem:[%s1631_s2 + $0x10] sm:$0xff] }
  0x20   :  { %1130 = vmatprep.subr.mxu0 %v321_v28  ;;  %1195 = vmatpush3.msra.mxu1 %v669_v50 }
  0x21   :  { %1131 = vmatpush3.msra.mxu0 %v321_v28  ;;  %1196 = vmatprep.subr.mxu1 %v668_v51 }
  0x22   :  { %143 = vperm.xlu1 %1278, %v71_v26   ;;  %140 = vperm.xlu0 %1277, %v70_v27  }
  0x23   :  { %1132 = vmatprep.subr.mxu0 %v320_v29  ;;  %1197 = vmatpush3.msra.mxu1 %v668_v51 }
  0x24   :  { %1133 = vmatpush3.msra.mxu0 %v320_v29  ;;  %1198 = vmatprep.subr.mxu1 %v667_v52 }
  0x25   :  { %1134 = vmatprep.subr.mxu0 %v319_v32  ;;  %1199 = vmatpush3.msra.mxu1 %v667_v52 }
  0x26   :  { %149 = vperm.xlu1 %1278, %v73_v30   ;;  %146 = vperm.xlu0 %1277, %v72_v31  }
  0x27   :  { %1135 = vmatpush3.msra.mxu0 %v319_v32  ;;  %1200 = vmatprep.subr.mxu1 %v666_v53 }
  0x28   :  { %1136 = vmatprep.subr.mxu0 %v318_v35  ;;  %1201 = vmatpush3.msra.mxu1 %v666_v53 }
  0x29   :  { %1137 = vmatpush3.msra.mxu0 %v318_v35  ;;  %1202 = vmatprep.subr.mxu1 %v665_v54  ;;  %v655_v35 = vld [vmem:[%s1631_s2] sm:$0xff] }
  0x2a   :  { %155 = vperm.xlu1 %1278, %v75_v33   ;;  %152 = vperm.xlu0 %1277, %v74_v34   ;;  %v656_v34 = vld [vmem:[%s1631_s2 + $0x8] sm:$0xff] }
  0x2b   :  { %1138 = vmatprep.subr.mxu0 %v317_v36  ;;  %1203 = vmatpush3.msra.mxu1 %v665_v54 }
  0x2c   :  { %1139 = vmatpush3.msra.mxu0 %v317_v36  ;;  %1204 = vmatprep.subr.mxu1 %v664_v55 }
  0x2d   :  { %1140 = vmatprep.subr.mxu0 %v316_v39  ;;  %1205 = vmatpush3.msra.mxu1 %v664_v55 }
  0x2e   :  { %161 = vperm.xlu1 %1278, %v77_v37   ;;  %158 = vperm.xlu0 %1277, %v76_v38  }
  0x2f   :  { %1141 = vmatpush3.msra.mxu0 %v316_v39  ;;  %1206 = vmatprep.subr.mxu1 %v663_v56 }
  0x30   :  { %1142 = vmatprep.subr.mxu0 %v315_v42  ;;  %1207 = vmatpush3.msra.mxu1 %v663_v56 }
  0x31   :  { %1143 = vmatpush3.msra.mxu0 %v315_v42  ;;  %1208 = vmatprep.subr.mxu1 %v662_v57 }
  0x32   :  { %167 = vperm.xlu1 %1278, %v79_v40   ;;  %164 = vperm.xlu0 %1277, %v78_v41  }
  0x33   :  { %1209 = vmatpush3.msra.mxu1 %v662_v57 }
  0x34   :  { %1210 = vmatprep.subr.mxu1 %v661_v58 }
  0x35   :  { %1211 = vmatpush3.msra.mxu1 %v661_v58 }
  0x36   :  { %173 = vperm.xlu1 %1278, %v81_v43   ;;  %170 = vperm.xlu0 %1277, %v80_v44  }
  0x37   :  { %1212 = vmatprep.subr.mxu1 %v660_v59 }
  0x38   :  { %1213 = vmatpush3.msra.mxu1 %v660_v59 }
  0x39   :  { %1214 = vmatprep.subr.mxu1 %v659_v60 }
  0x3a   :  { %179 = vperm.xlu1 %1278, %v83_v45   ;;  %176 = vperm.xlu0 %1277, %v82_v46  }
  0x3b   :  { %1215 = vmatpush3.msra.mxu1 %v659_v60 }
  0x3c   :  { %1216 = vmatprep.subr.mxu1 %v658_v61 }
  0x3d   :  { %1217 = vmatpush3.msra.mxu1 %v658_v61 }
  0x3e   :  { %185 = vperm.xlu1 %1278, %v85_v47   ;;  %182 = vperm.xlu0 %1277, %v84_v48  }
  0x3f   :  { %1218 = vmatprep.subr.mxu1 %v657_v62 }
  0x40   :  { %1219 = vmatpush3.msra.mxu1 %v657_v62 }
  0x41   :  { %1220 = vmatprep.subr.mxu1 %v656_v34 }
  0x42   :  { %1221 = vmatpush3.msra.mxu1 %v656_v34 }
  0x43   :  { %1222 = vmatprep.subr.mxu1 %v655_v35 }
  0x44   :  { %1223 = vmatpush3.msra.mxu1 %v655_v35 }
  0x7d   :  { %v99_v1 = vpop.permute.xlu1 %98  ;;  %v93_v2 = vpop.permute.xlu0 %92 }
  0x7e   :  { %vm187_vm0 = vcmp.eq.s32.totalorder %v1517_v0, %v93_v2  ;;  %vm189_vm1 = vcmp.eq.s32.totalorder %v1517_v0, %v99_v1 }
  0x7f   :  { %1144 = vmatprep.mubr.msk.f32.mxu0 %vm187_vm0, %v1302_v3 }
  0x81   :  { %v102_v4 = vpop.permute.xlu1 %101  ;;  %v96_v5 = vpop.permute.xlu0 %95 }
  0x82   :  { %vm188_vm2 = vcmp.eq.s32.totalorder %v1517_v0, %v96_v5  ;;  %vm190_vm3 = vcmp.eq.s32.totalorder %v1517_v0, %v102_v4  ;;  %v1592_v4 = vld [vmem:[%s1632_s3] ss:$0 sm:$0xff]  ;;  %s1303_s3 = smov [#allocation3]  }
  0x83   :  { %1145 = vmatmul.mubr.msk.f32.vlgmr.msra.gmra.mxu0 %vm188_vm2, %v1302_v3  ;;  %s940_s11 = sshll.u32 %s1303_s3, 4  ;;  %s941_s11 = int_to_ptr.vmem [resolvable:$true] %s940_s11 }
  0x84   :  { %1147 = vmatprep.mubr.msk.f32.mxu0 %vm189_vm1, %v1302_v3  ;;  %s1279_s12 = scalar_lea.vmem %s941_s11, 4096  ;;  %p1284_p1 = scmp.lt.s32.totalorder %s941_s11, %s941_s11 }
  0x85   :  { %v108_v6 = vpop.permute.xlu1 %107  ;;  %v105_v7 = vpop.permute.xlu0 %104  ;;  %p1280_p0 = scmp.ne.s32.totalorder %s941_s11, %s1279_s12  ;;  %p1285_p2 = scmp.lt.s32.totalorder %s1279_s12, %s1279_s12 }
  0x86   :  { %vm191_vm4 = vcmp.eq.s32.totalorder %v1517_v0, %v105_v7  ;;  %vm192_vm5 = vcmp.eq.s32.totalorder %v1517_v0, %v108_v6 }
  0x87   :  { %1148 = vmatmul.mubr.msk.f32.gmra.mxu0 %vm190_vm3, %v1302_v3  ;;  %p1286_p3 = por %p1285_p2, %p1284_p1 }
  0x88   :  { %1150 = vmatprep.mubr.msk.f32.mxu0 %vm191_vm4, %v1302_v3 }
  0x89   :  { %v114_v8 = vpop.permute.xlu1 %113  ;;  %v111_v9 = vpop.permute.xlu0 %110  ;;  %p1287_p4 = pnand %p1286_p3, %p1280_p0 }
  0x8a   :  { %vm193_vm6 = vcmp.eq.s32.totalorder %v1517_v0, %v111_v9  ;;  %vm194_vm7 = vcmp.eq.s32.totalorder %v1517_v0, %v114_v8 }
  0x8b   :  { %1151 = vmatmul.mubr.msk.f32.gmra.mxu0 %vm192_vm5, %v1302_v3 }
  0x8c   :  { %1153 = vmatprep.mubr.msk.f32.mxu0 %vm193_vm6, %v1302_v3 }
  0x8d   :  { %v120_v10 = vpop.permute.xlu1 %119  ;;  %v117_v11 = vpop.permute.xlu0 %116 }
  0x8e   :  { %vm195_vm8 = vcmp.eq.s32.totalorder %v1517_v0, %v117_v11  ;;  %vm196_vm9 = vcmp.eq.s32.totalorder %v1517_v0, %v120_v10 }
  0x8f   :  { %1154 = vmatmul.mubr.msk.f32.gmra.mxu0 %vm194_vm7, %v1302_v3 }
  0x90   :  { %1156 = vmatprep.mubr.msk.f32.mxu0 %vm195_vm8, %v1302_v3 }
  0x91   :  { %v126_v12 = vpop.permute.xlu1 %125  ;;  %v123_v13 = vpop.permute.xlu0 %122 }
  0x92   :  { %vm197_vm10 = vcmp.eq.s32.totalorder %v1517_v0, %v123_v13  ;;  %vm198_vm11 = vcmp.eq.s32.totalorder %v1517_v0, %v126_v12 }
  0x93   :  { %1157 = vmatmul.mubr.msk.f32.gmra.mxu0 %vm196_vm9, %v1302_v3 }
  0x94   :  { %1159 = vmatprep.mubr.msk.f32.mxu0 %vm197_vm10, %v1302_v3 }
  0x95   :  { %v132_v14 = vpop.permute.xlu1 %131  ;;  %v129_v15 = vpop.permute.xlu0 %128 }
  0x96   :  { %vm199_vm12 = vcmp.eq.s32.totalorder %v1517_v0, %v129_v15  ;;  %vm200_vm13 = vcmp.eq.s32.totalorder %v1517_v0, %v132_v14 }
  0x97   :  { %1160 = vmatmul.mubr.msk.f32.gmra.mxu0 %vm198_vm11, %v1302_v3 }
  0x98   :  { %1162 = vmatprep.mubr.msk.f32.mxu0 %vm199_vm12, %v1302_v3 }
  0x99   :  { %v138_v16 = vpop.permute.xlu1 %137  ;;  %v135_v17 = vpop.permute.xlu0 %134 }
  0x9a   :  { %vm201_vm14 = vcmp.eq.s32.totalorder %v1517_v0, %v135_v17  ;;  %vm202_vm15 = vcmp.eq.s32.totalorder %v1517_v0, %v138_v16 }
  0x9b   :  { %1163 = vmatmul.mubr.msk.f32.gmra.mxu0 %vm200_vm13, %v1302_v3 }
  0x9c   :  { %1165 = vmatprep.mubr.msk.f32.mxu0 %vm201_vm14, %v1302_v3 }
  0x9d   :  { %v144_v18 = vpop.permute.xlu1 %143  ;;  %v141_v19 = vpop.permute.xlu0 %140 }
  0x9e   :  { %vm203_vm0 = vcmp.eq.s32.totalorder %v1517_v0, %v141_v19  ;;  %vm204_vm1 = vcmp.eq.s32.totalorder %v1517_v0, %v144_v18 }
  0x9f   :  { %1166 = vmatmul.mubr.msk.f32.gmra.mxu0 %vm202_vm15, %v1302_v3 }
  0xa0   :  { %1168 = vmatprep.mubr.msk.f32.mxu0 %vm203_vm0, %v1302_v3 }
  0xa1   :  { %v150_v20 = vpop.permute.xlu1 %149  ;;  %v147_v21 = vpop.permute.xlu0 %146 }
  0xa2   :  { %vm205_vm2 = vcmp.eq.s32.totalorder %v1517_v0, %v147_v21  ;;  %vm206_vm3 = vcmp.eq.s32.totalorder %v1517_v0, %v150_v20 }
  0xa3   :  { %1169 = vmatmul.mubr.msk.f32.gmra.mxu0 %vm204_vm1, %v1302_v3 }
  0xa4   :  { %1171 = vmatprep.mubr.msk.f32.mxu0 %vm205_vm2, %v1302_v3 }
  0xa5   :  { %v156_v22 = vpop.permute.xlu1 %155  ;;  %v153_v23 = vpop.permute.xlu0 %152 }
  0xa6   :  { %vm207_vm4 = vcmp.eq.s32.totalorder %v1517_v0, %v153_v23  ;;  %vm208_vm5 = vcmp.eq.s32.totalorder %v1517_v0, %v156_v22 }
  0xa7   :  { %1172 = vmatmul.mubr.msk.f32.gmra.mxu0 %vm206_vm3, %v1302_v3 }
  0xa8   :  { %1174 = vmatprep.mubr.msk.f32.mxu0 %vm207_vm4, %v1302_v3 }
  0xa9   :  { %v162_v24 = vpop.permute.xlu1 %161  ;;  %v159_v25 = vpop.permute.xlu0 %158 }
  0xaa   :  { %vm209_vm6 = vcmp.eq.s32.totalorder %v1517_v0, %v159_v25  ;;  %vm210_vm7 = vcmp.eq.s32.totalorder %v1517_v0, %v162_v24 }
  0xab   :  { %1175 = vmatmul.mubr.msk.f32.gmra.mxu0 %vm208_vm5, %v1302_v3 }
  0xac   :  { %1177 = vmatprep.mubr.msk.f32.mxu0 %vm209_vm6, %v1302_v3 }
  0xad   :  { %v168_v26 = vpop.permute.xlu1 %167  ;;  %v165_v27 = vpop.permute.xlu0 %164 }
  0xae   :  { %vm211_vm8 = vcmp.eq.s32.totalorder %v1517_v0, %v165_v27  ;;  %vm212_vm9 = vcmp.eq.s32.totalorder %v1517_v0, %v168_v26 }
  0xaf   :  { %1178 = vmatmul.mubr.msk.f32.gmra.mxu0 %vm210_vm7, %v1302_v3 }
  0xb0   :  { %1180 = vmatprep.mubr.msk.f32.mxu0 %vm211_vm8, %v1302_v3 }
  0xb1   :  { %v174_v28 = vpop.permute.xlu1 %173  ;;  %v171_v29 = vpop.permute.xlu0 %170 }
  0xb2   :  { %vm213_vm10 = vcmp.eq.s32.totalorder %v1517_v0, %v171_v29  ;;  %vm214_vm11 = vcmp.eq.s32.totalorder %v1517_v0, %v174_v28 }
  0xb3   :  { %1181 = vmatmul.mubr.msk.f32.gmra.mxu0 %vm212_vm9, %v1302_v3 }
  0xb4   :  { %1183 = vmatprep.mubr.msk.f32.mxu0 %vm213_vm10, %v1302_v3 }
  0xb5   :  { %v180_v30 = vpop.permute.xlu1 %179  ;;  %v177_v31 = vpop.permute.xlu0 %176 }
  0xb6   :  { %vm215_vm12 = vcmp.eq.s32.totalorder %v1517_v0, %v177_v31  ;;  %vm216_vm13 = vcmp.eq.s32.totalorder %v1517_v0, %v180_v30 }
  0xb7   :  { %1184 = vmatmul.mubr.msk.f32.gmra.mxu0 %vm214_vm11, %v1302_v3 }
  0xb8   :  { %1186 = vmatprep.mubr.msk.f32.mxu0 %vm215_vm12, %v1302_v3 }
  0xb9   :  { %v183_v32 = vpop.permute.xlu0 %182  ;;  %v186_v33 = vpop.permute.xlu1 %185 }
  0xba   :  { %vm217_vm14 = vcmp.eq.s32.totalorder %v1517_v0, %v183_v32  ;;  %vm218_vm15 = vcmp.eq.s32.totalorder %v1517_v0, %v186_v33 }
  0xbb   :  { %1187 = vmatmul.mubr.msk.f32.gmra.mxu0 %vm216_vm13, %v1302_v3 }
  0xbc   :  { %1189 = vmatprep.mubr.msk.f32.mxu0 %vm217_vm14, %v1302_v3 }
  0xbf   :  { %1190 = vmatmul.mubr.msk.f32.gmra.mxu0 %vm218_vm15, %v1302_v3 }
 0x143   :  { %v1146_v36 = vpop.f32.mrf.mxu0 }
 0x145   :  { %v397_v37 = vpop.f32.mrf.mxu0 }
 0x146   :  { %1224 = vmatprep.mubr.f32.mxu1 %v397_v37 }
 0x147   :  { %v1149_v38 = vpop.f32.mrf.mxu0  ;;  %1225 = vmatmul.mubr.f32.vlgmr.msra.gmra.mxu1 %v1146_v36 }
 0x149   :  { %v407_v39 = vpop.f32.mrf.mxu0 }
 0x14a   :  { %1227 = vmatprep.mubr.f32.mxu1 %v407_v39 }
 0x14b   :  { %v1152_v40 = vpop.f32.mrf.mxu0  ;;  %1228 = vmatmul.mubr.f32.gmra.mxu1 %v1149_v38 }
 0x14d   :  { %v417_v41 = vpop.f32.mrf.mxu0 }
 0x14e   :  { %1230 = vmatprep.mubr.f32.mxu1 %v417_v41 }
 0x14f   :  { %v1155_v42 = vpop.f32.mrf.mxu0  ;;  %1231 = vmatmul.mubr.f32.gmra.mxu1 %v1152_v40 }
 0x151   :  { %v427_v43 = vpop.f32.mrf.mxu0 }
 0x152   :  { %1233 = vmatprep.mubr.f32.mxu1 %v427_v43 }
 0x153   :  { %v1158_v44 = vpop.f32.mrf.mxu0  ;;  %1234 = vmatmul.mubr.f32.gmra.mxu1 %v1155_v42 }
 0x155   :  { %v437_v45 = vpop.f32.mrf.mxu0 }
 0x156   :  { %1236 = vmatprep.mubr.f32.mxu1 %v437_v45 }
 0x157   :  { %v1161_v46 = vpop.f32.mrf.mxu0  ;;  %1237 = vmatmul.mubr.f32.gmra.mxu1 %v1158_v44 }
 0x159   :  { %v447_v47 = vpop.f32.mrf.mxu0 }
 0x15a   :  { %1239 = vmatprep.mubr.f32.mxu1 %v447_v47 }
 0x15b   :  { %v1164_v48 = vpop.f32.mrf.mxu0  ;;  %1240 = vmatmul.mubr.f32.gmra.mxu1 %v1161_v46 }
 0x15d   :  { %v457_v49 = vpop.f32.mrf.mxu0 }
 0x15e   :  { %1242 = vmatprep.mubr.f32.mxu1 %v457_v49 }
 0x15f   :  { %v1167_v50 = vpop.f32.mrf.mxu0  ;;  %1243 = vmatmul.mubr.f32.gmra.mxu1 %v1164_v48 }
 0x161   :  { %v467_v51 = vpop.f32.mrf.mxu0 }
 0x162   :  { %1245 = vmatprep.mubr.f32.mxu1 %v467_v51 }
 0x163   :  { %v1170_v52 = vpop.f32.mrf.mxu0  ;;  %1246 = vmatmul.mubr.f32.gmra.mxu1 %v1167_v50 }
 0x165   :  { %v477_v53 = vpop.f32.mrf.mxu0 }
 0x166   :  { %1248 = vmatprep.mubr.f32.mxu1 %v477_v53 }
 0x167   :  { %v1173_v54 = vpop.f32.mrf.mxu0  ;;  %1249 = vmatmul.mubr.f32.gmra.mxu1 %v1170_v52 }
 0x169   :  { %v487_v55 = vpop.f32.mrf.mxu0 }
 0x16a   :  { %1251 = vmatprep.mubr.f32.mxu1 %v487_v55 }
 0x16b   :  { %v1176_v56 = vpop.f32.mrf.mxu0  ;;  %1252 = vmatmul.mubr.f32.gmra.mxu1 %v1173_v54 }
 0x16d   :  { %v497_v57 = vpop.f32.mrf.mxu0 }
 0x16e   :  { %1254 = vmatprep.mubr.f32.mxu1 %v497_v57 }
 0x16f   :  { %v1179_v58 = vpop.f32.mrf.mxu0  ;;  %1255 = vmatmul.mubr.f32.gmra.mxu1 %v1176_v56 }
 0x171   :  { %v507_v59 = vpop.f32.mrf.mxu0 }
 0x172   :  { %1257 = vmatprep.mubr.f32.mxu1 %v507_v59 }
 0x173   :  { %v1182_v60 = vpop.f32.mrf.mxu0  ;;  %1258 = vmatmul.mubr.f32.gmra.mxu1 %v1179_v58 }
 0x175   :  { %v517_v61 = vpop.f32.mrf.mxu0 }
 0x176   :  { %1260 = vmatprep.mubr.f32.mxu1 %v517_v61 }
 0x177   :  { %v1185_v62 = vpop.f32.mrf.mxu0  ;;  %1261 = vmatmul.mubr.f32.gmra.mxu1 %v1182_v60 }
 0x179   :  { %v527_v63 = vpop.f32.mrf.mxu0 }
 0x17a   :  { %1263 = vmatprep.mubr.f32.mxu1 %v527_v63 }
 0x17b   :  { %v1188_v0 = vpop.f32.mrf.mxu0  ;;  %1264 = vmatmul.mubr.f32.gmra.mxu1 %v1185_v62 }
 0x17d   :  { %v537_v1 = vpop.f32.mrf.mxu0 }
 0x17e   :  { %1266 = vmatprep.mubr.f32.mxu1 %v537_v1 }
 0x17f   :  { %v1191_v2 = vpop.f32.mrf.mxu0  ;;  %1267 = vmatmul.mubr.f32.gmra.mxu1 %v1188_v0 }
 0x181   :  { %v547_v3 = vpop.f32.mrf.mxu0 }
 0x182   :  { %1269 = vmatprep.mubr.f32.mxu1 %v547_v3 }
 0x183   :  { %1270 = vmatmul.mubr.f32.gmra.mxu1 %v1191_v2 }
 0x207   :  { %v1226_v5 = vpop.f32.mrf.mxu1 }
 0x208   :  { %v750_v6 = vadd.f32 %v1226_v5, %v1592_v4 }
 0x209   :  { %v744_v7 = vpop.f32.mrf.mxu1 }
 0x20a   :  { %904 = vst [vmem:[#allocation3 + $0x8] sm:$0xff] %v750_v6  ;;  %v745_v8 = vadd.f32 %v1592_v4, %v744_v7 }
 0x20b   :  { %v1229_v9 = vpop.f32.mrf.mxu1 }
 0x20c   :  { %903 = vst [vmem:[#allocation3] sm:$0xff] %v745_v8  ;;  %v760_v10 = vadd.f32 %v1229_v9, %v1592_v4 }
 0x20d   :  { %v754_v11 = vpop.f32.mrf.mxu1 }
 0x20e   :  { %906 = vst [vmem:[#allocation3 + $0x18] sm:$0xff] %v760_v10  ;;  %v755_v12 = vadd.f32 %v1592_v4, %v754_v11 }
 0x20f   :  { %v1232_v13 = vpop.f32.mrf.mxu1 }
 0x210   :  { %905 = vst [vmem:[#allocation3 + $0x10] sm:$0xff] %v755_v12  ;;  %v770_v14 = vadd.f32 %v1232_v13, %v1592_v4 }
 0x211   :  { %v764_v15 = vpop.f32.mrf.mxu1 }
 0x212   :  { %908 = vst [vmem:[#allocation3 + $0x28] sm:$0xff] %v770_v14  ;;  %v765_v16 = vadd.f32 %v1592_v4, %v764_v15 }
 0x213   :  { %v1235_v17 = vpop.f32.mrf.mxu1 }
 0x214   :  { %907 = vst [vmem:[#allocation3 + $0x20] sm:$0xff] %v765_v16  ;;  %v780_v18 = vadd.f32 %v1235_v17, %v1592_v4 }
 0x215   :  { %v774_v19 = vpop.f32.mrf.mxu1 }
 0x216   :  { %910 = vst [vmem:[#allocation3 + $0x38] sm:$0xff] %v780_v18  ;;  %v775_v20 = vadd.f32 %v1592_v4, %v774_v19 }
 0x217   :  { %v1238_v21 = vpop.f32.mrf.mxu1 }
 0x218   :  { %909 = vst [vmem:[#allocation3 + $0x30] sm:$0xff] %v775_v20  ;;  %v790_v22 = vadd.f32 %v1238_v21, %v1592_v4 }
 0x219   :  { %v784_v23 = vpop.f32.mrf.mxu1 }
 0x21a   :  { %912 = vst [vmem:[#allocation3 + $0x48] sm:$0xff] %v790_v22  ;;  %v785_v24 = vadd.f32 %v1592_v4, %v784_v23 }
 0x21b   :  { %v1241_v25 = vpop.f32.mrf.mxu1 }
 0x21c   :  { %911 = vst [vmem:[#allocation3 + $0x40] sm:$0xff] %v785_v24  ;;  %v800_v26 = vadd.f32 %v1241_v25, %v1592_v4 }
 0x21d   :  { %v794_v27 = vpop.f32.mrf.mxu1 }
 0x21e   :  { %914 = vst [vmem:[#allocation3 + $0x58] sm:$0xff] %v800_v26  ;;  %v795_v28 = vadd.f32 %v1592_v4, %v794_v27 }
 0x21f   :  { %v1244_v29 = vpop.f32.mrf.mxu1 }
 0x220   :  { %913 = vst [vmem:[#allocation3 + $0x50] sm:$0xff] %v795_v28  ;;  %v810_v30 = vadd.f32 %v1244_v29, %v1592_v4 }
 0x221   :  { %v804_v31 = vpop.f32.mrf.mxu1 }
 0x222   :  { %916 = vst [vmem:[#allocation3 + $0x68] sm:$0xff] %v810_v30  ;;  %v805_v32 = vadd.f32 %v1592_v4, %v804_v31 }
 0x223   :  { %v1247_v33 = vpop.f32.mrf.mxu1 }
 0x224   :  { %915 = vst [vmem:[#allocation3 + $0x60] sm:$0xff] %v805_v32  ;;  %v820_v34 = vadd.f32 %v1247_v33, %v1592_v4 }
 0x225   :  { %v814_v35 = vpop.f32.mrf.mxu1 }
 0x226   :  { %918 = vst [vmem:[#allocation3 + $0x78] sm:$0xff] %v820_v34  ;;  %v815_v36 = vadd.f32 %v1592_v4, %v814_v35 }
 0x227   :  { %v1250_v37 = vpop.f32.mrf.mxu1 }
 0x228   :  { %917 = vst [vmem:[#allocation3 + $0x70] sm:$0xff] %v815_v36  ;;  %v830_v38 = vadd.f32 %v1250_v37, %v1592_v4 }
 0x229   :  { %v824_v39 = vpop.f32.mrf.mxu1 }
 0x22a   :  { %920 = vst [vmem:[#allocation3 + $0x88] sm:$0xff] %v830_v38  ;;  %v825_v40 = vadd.f32 %v1592_v4, %v824_v39 }
 0x22b   :  { %v1253_v41 = vpop.f32.mrf.mxu1 }
 0x22c   :  { %919 = vst [vmem:[#allocation3 + $0x80] sm:$0xff] %v825_v40  ;;  %v840_v42 = vadd.f32 %v1253_v41, %v1592_v4 }
 0x22d   :  { %v834_v43 = vpop.f32.mrf.mxu1 }
 0x22e   :  { %922 = vst [vmem:[#allocation3 + $0x98] sm:$0xff] %v840_v42  ;;  %v835_v44 = vadd.f32 %v1592_v4, %v834_v43 }
 0x22f   :  { %v1256_v45 = vpop.f32.mrf.mxu1 }
 0x230   :  { %921 = vst [vmem:[#allocation3 + $0x90] sm:$0xff] %v835_v44  ;;  %v850_v46 = vadd.f32 %v1256_v45, %v1592_v4 }
 0x231   :  { %v844_v47 = vpop.f32.mrf.mxu1 }
 0x232   :  { %924 = vst [vmem:[#allocation3 + $0xa8] sm:$0xff] %v850_v46  ;;  %v845_v48 = vadd.f32 %v1592_v4, %v844_v47 }
 0x233   :  { %v1259_v49 = vpop.f32.mrf.mxu1 }
 0x234   :  { %923 = vst [vmem:[#allocation3 + $0xa0] sm:$0xff] %v845_v48  ;;  %v860_v50 = vadd.f32 %v1259_v49, %v1592_v4 }
 0x235   :  { %v854_v51 = vpop.f32.mrf.mxu1 }
 0x236   :  { %926 = vst [vmem:[#allocation3 + $0xb8] sm:$0xff] %v860_v50  ;;  %v855_v52 = vadd.f32 %v1592_v4, %v854_v51 }
 0x237   :  { %v1262_v53 = vpop.f32.mrf.mxu1 }
 0x238   :  { %925 = vst [vmem:[#allocation3 + $0xb0] sm:$0xff] %v855_v52  ;;  %v870_v54 = vadd.f32 %v1262_v53, %v1592_v4 }
 0x239   :  { %v864_v55 = vpop.f32.mrf.mxu1 }
 0x23a   :  { %928 = vst [vmem:[#allocation3 + $0xc8] sm:$0xff] %v870_v54  ;;  %v865_v56 = vadd.f32 %v1592_v4, %v864_v55 }
 0x23b   :  { %v1265_v57 = vpop.f32.mrf.mxu1 }
 0x23c   :  { %927 = vst [vmem:[#allocation3 + $0xc0] sm:$0xff] %v865_v56  ;;  %v880_v58 = vadd.f32 %v1265_v57, %v1592_v4 }
 0x23d   :  { %v874_v59 = vpop.f32.mrf.mxu1 }
 0x23e   :  { %930 = vst [vmem:[#allocation3 + $0xd8] sm:$0xff] %v880_v58  ;;  %v875_v60 = vadd.f32 %v1592_v4, %v874_v59 }
 0x23f   :  { %v1268_v61 = vpop.f32.mrf.mxu1 }
 0x240   :  { %929 = vst [vmem:[#allocation3 + $0xd0] sm:$0xff] %v875_v60  ;;  %v890_v62 = vadd.f32 %v1268_v61, %v1592_v4 }
 0x241   :  { %v884_v63 = vpop.f32.mrf.mxu1 }
 0x242   :  { %932 = vst [vmem:[#allocation3 + $0xe8] sm:$0xff] %v890_v62  ;;  %v885_v0 = vadd.f32 %v1592_v4, %v884_v63 }
 0x243   :  { %v1271_v1 = vpop.f32.mrf.mxu1 }
 0x244   :  { %931 = vst [vmem:[#allocation3 + $0xe0] sm:$0xff] %v885_v0  ;;  %v900_v2 = vadd.f32 %v1271_v1, %v1592_v4 }
 0x245   :  { %v894_v3 = vpop.f32.mrf.mxu1 }
 0x246   :  { %934 = vst [vmem:[#allocation3 + $0xf8] sm:$0xff] %v900_v2  ;;  %v895_v5 = vadd.f32 %v1592_v4, %v894_v3 }
 0x248   :  { %933 = vst [vmem:[#allocation3 + $0xf0] sm:$0xff] %v895_v5 }
 0x249   :  { %1290 = shalt.err (!%p1287_p4)
}
 0x24a   :  { %s1304_s0 = smov 128   ;;  %s1305_s13 = smov 8  }
 0x24b   :  { %946 = dma.vmem_to_hbm [thread:$0]  %s941_s11, 4096, %s1633_s4, [#allocation4], %s1304_s0, %s1304_s0, %s1305_s13  }
 0x24c   :  { %1299 = dma.done.wait [#allocation4], 4096  }
 0x24d   :  { %1300 = vsyncadd [#allocation4], 4294963200 }
 0x24e   :  { %950 = vsyncpa [#allocation4], 1 }

</bundles_post_ra>
